<compile_context>
chip_gen: v7x
topology: tpu7x:2x2x1
jax: 0.10.0
libtpu: 0.0.40
codegen_flags: <defaults>
</compile_context>

<pallas_src>
import functools
from math import sqrt

import jax
import jax.numpy as jnp
from jax.experimental import pallas as pl
from jax.experimental.pallas import tpu as pltpu


def _round_up(x, m):
    return ((x + m - 1) // m) * m


def _transe_margin_kernel(dpos_ref, dneg_ref, out_ref, *, batch, tile_b):
    """Per-tile TransE margin partial sum.

    dpos_ref / dneg_ref: (tile_b, k) blocks of the pre-fused differences
        E[h] + R[l] - E[t]  and  E[hp] + R[l] - E[tp]  (native storage dtype).
    out_ref: (1, 8, 128) f32 block; filled with this tile's partial sum of
        relu(d_pos - d_neg + 1) so the store is one unmasked lane-dense write.
    """
    # Upcast right after load; squares/sums/sqrt stay in f32 even if the
    # embedding tables (and hence the streamed diffs) are stored in bf16.
    dp = dpos_ref[...].astype(jnp.float32)                # (tile_b, k)
    dn = dneg_ref[...].astype(jnp.float32)                # (tile_b, k)

    # L2 norm along the embedding (lane) axis — XLU cross-lane reduce.
    d_pos = jnp.sqrt(jnp.sum(dp * dp, axis=1, keepdims=True))   # (tile_b, 1)
    d_neg = jnp.sqrt(jnp.sum(dn * dn, axis=1, keepdims=True))   # (tile_b, 1)

    margin = jnp.maximum(d_pos - d_neg + 1.0, 0.0)        # relu(result_c)

    # Tail-tile masking: rows past the true batch must not contribute.
    # Keep this as a select (jnp.where), not a multiply-by-mask.
    row = pl.program_id(0) * tile_b + jax.lax.broadcasted_iota(
        jnp.int32, (tile_b, 1), 0)
    margin = jnp.where(row < batch, margin, 0.0)

    partial = jnp.sum(margin)
    out_ref[...] = jnp.full(out_ref.shape, partial, dtype=out_ref.dtype)


def transe_forward(E, R, h, t, hp, tp, l, *, tile_b=None):
    """TransE loss: mean(relu(||E[h]+R[l]-E[t]|| - ||E[hp]+R[l]-E[tp]|| + 1))."""
    # Fuse the gathers and the add/sub in the wrapper: XLA emits one
    # gather+elementwise fusion per diff, and the kernel streams only two
    # (B, k) arrays instead of five (2.5x less kernel HBM read traffic).
    # TODO(synk): for small entity tables E could be kept VMEM-resident with
    # in-kernel gathers, collapsing HBM traffic to (table + index) bytes.
    diff_pos_in = E[h] + R[l] - E[t]                      # (B, k), native dtype
    diff_neg_in = E[hp] + R[l] - E[tp]                    # (B, k), native dtype

    B, k = diff_pos_in.shape

    if tile_b is None:
        # 2 streams x 2 pipeline buffers x 512 B padded-row (k pads to 128
        # lanes) => tile_b=4096 uses ~8 MiB of pipeline VMEM: fits the default
        # scoped-VMEM limit on v5e/v6e/v7x.
        tile_b = 4096
        # Guarantee >= 2 grid tiles so the "parallel" batch axis shards across
        # both v7x TensorCores (no effect on single-TC v5e/v6e).
        tile_b = min(tile_b, _round_up(pl.cdiv(B, 2), 8))
    tile_b = max(8, _round_up(min(tile_b, _round_up(B, 8)), 8))
    num_tiles = pl.cdiv(B, tile_b)

    kernel = functools.partial(_transe_margin_kernel, batch=B, tile_b=tile_b)

    in_bytes = 2 * B * k * diff_pos_in.dtype.itemsize
    cost = pl.CostEstimate(
        flops=4 * B * k + 5 * B,
        transcendentals=2 * B,
        bytes_accessed=in_bytes + num_tiles * 8 * 128 * 4,
    )

    partials = pl.pallas_call(
        kernel,
        out_shape=jax.ShapeDtypeStruct((num_tiles, 8, 128), jnp.float32),
        grid_spec=pltpu.PrefetchScalarGridSpec(
            num_scalar_prefetch=0,
            grid=(num_tiles,),
            in_specs=[pl.BlockSpec((tile_b, k), lambda i: (i, 0))] * 2,
            out_specs=pl.BlockSpec((1, 8, 128), lambda i: (i, 0, 0)),
        ),
        compiler_params=pltpu.CompilerParams(
            dimension_semantics=("parallel",),
        ),
        cost_estimate=cost,
    )(diff_pos_in, diff_neg_in)

    # Tiny epilogue: per-tile partial sums -> mean over the true batch size.
    return jnp.sum(partials[:, 0, 0]) / B


if __name__ == "__main__":
    # Deterministic parameter init mirroring the module's __init__:
    #   uniform(-6/sqrt(k), 6/sqrt(k)) for E (n_e, k) and R (n_r, k).
    n_e, n_r, k = 64, 16, 50
    batch = 200                      # deliberately not a multiple of the tile
    bound = 6.0 / sqrt(k)

    key = jax.random.PRNGKey(0)
    k_e, k_r, k_h, k_t, k_hp, k_tp, k_l = jax.random.split(key, 7)

    E = jax.random.uniform(k_e, (n_e, k), jnp.float32, minval=-bound, maxval=bound)
    R = jax.random.uniform(k_r, (n_r, k), jnp.float32, minval=-bound, maxval=bound)

    h = jax.random.randint(k_h, (batch,), 0, n_e, dtype=jnp.int32)
    t = jax.random.randint(k_t, (batch,), 0, n_e, dtype=jnp.int32)
    hp = jax.random.randint(k_hp, (batch,), 0, n_e, dtype=jnp.int32)
    tp = jax.random.randint(k_tp, (batch,), 0, n_e, dtype=jnp.int32)
    l = jax.random.randint(k_l, (batch,), 0, n_r, dtype=jnp.int32)

    # Pure-JAX reference.
    def ref_forward(E, R, h, t, hp, tp, l):
        d_pos = jnp.linalg.norm(E[h] + R[l] - E[t], axis=1)
        d_neg = jnp.linalg.norm(E[hp] + R[l] - E[tp], axis=1)
        return jnp.mean(jax.nn.relu(d_pos - d_neg + 1.0))

    ref = ref_forward(E, R, h, t, hp, tp, l)

    # (1) Explicit tile with a ragged tail (batch=200, tile_b=128 -> 2 tiles).
    loss_tiled = transe_forward(E, R, h, t, hp, tp, l, tile_b=128)
    jax.block_until_ready(loss_tiled)
    assert jnp.allclose(loss_tiled, ref, atol=1e-5, rtol=1e-5), (loss_tiled, ref)

    # (2) Default tile size: capped at ceil(B/2) rounded to 8 -> 2 balanced
    #     tiles so both v7x TensorCores get work.
    loss_default = transe_forward(E, R, h, t, hp, tp, l)
    jax.block_until_ready(loss_default)
    assert jnp.allclose(loss_default, ref, atol=1e-5, rtol=1e-5), (loss_default, ref)

    # (3) Oversized explicit tile (single tile covering the whole batch).
    loss_single = transe_forward(E, R, h, t, hp, tp, l, tile_b=1024)
    jax.block_until_ready(loss_single)
    assert jnp.allclose(loss_single, ref, atol=1e-5, rtol=1e-5), (loss_single, ref)

    print("KERNEL_OK")
</pallas_src>

<mosaic_0001>
module attributes {stable_mosaic.version = 11 : i64} {
  func.func @_transe_margin_kernel(%arg0: i32, %arg1: memref<128x50xf32, #tpu.memory_space<vmem>>, %arg2: memref<128x50xf32, #tpu.memory_space<vmem>>, %arg3: memref<1x8x128xf32, #tpu.memory_space<vmem>>) attributes {dimension_semantics = [#tpu.dimension_semantics<parallel>], iteration_bounds = array<i64: 2>, scalar_prefetch = 0 : i64, scratch_operands = 0 : i64, tpu.core_type = #tpu.core_type<tc>, window_params = [{transform_indices = @transform_0, window_bounds = array<i64: 128, 50>}, {transform_indices = @transform_1, window_bounds = array<i64: 128, 50>}, {transform_indices = @transform_2, window_bounds = array<i64: 1, 8, 128>}]} {
    %c0 = arith.constant 0 : index
    %c0_0 = arith.constant 0 : index
    %0 = vector.load %arg1[%c0, %c0_0] : memref<128x50xf32, #tpu.memory_space<vmem>>, vector<128x50xf32>
    %c0_1 = arith.constant 0 : index
    %c0_2 = arith.constant 0 : index
    %1 = vector.load %arg2[%c0_1, %c0_2] : memref<128x50xf32, #tpu.memory_space<vmem>>, vector<128x50xf32>
    %2 = arith.mulf %0, %0 : vector<128x50xf32>
    %cst = arith.constant dense<0.000000e+00> : vector<128xf32>
    %3 = vector.multi_reduction <add>, %2, %cst [1] : vector<128x50xf32> to vector<128xf32>
    %4 = vector.shape_cast %3 : vector<128xf32> to vector<128x1xf32>
    %5 = math.sqrt %4 : vector<128x1xf32>
    %6 = arith.mulf %1, %1 : vector<128x50xf32>
    %cst_3 = arith.constant dense<0.000000e+00> : vector<128xf32>
    %7 = vector.multi_reduction <add>, %6, %cst_3 [1] : vector<128x50xf32> to vector<128xf32>
    %8 = vector.shape_cast %7 : vector<128xf32> to vector<128x1xf32>
    %9 = math.sqrt %8 : vector<128x1xf32>
    %10 = arith.subf %5, %9 : vector<128x1xf32>
    %cst_4 = arith.constant 1.000000e+00 : f32
    %11 = vector.broadcast %cst_4 : f32 to vector<128x1xf32>
    %12 = arith.addf %10, %11 : vector<128x1xf32>
    %cst_5 = arith.constant 0.000000e+00 : f32
    %13 = vector.broadcast %cst_5 : f32 to vector<128x1xf32>
    %14 = arith.maximumf %12, %13 : vector<128x1xf32>
    %c128_i32 = arith.constant 128 : i32
    %15 = arith.muli %arg0, %c128_i32 : i32
    %16 = tpu.iota {dimensions = array<i32: 0>} : vector<128x1xi32>
    %17 = vector.broadcast %15 : i32 to vector<128x1xi32>
    %18 = arith.addi %17, %16 : vector<128x1xi32>
    %c200_i32 = arith.constant 200 : i32
    %19 = vector.broadcast %c200_i32 : i32 to vector<128x1xi32>
    %20 = arith.cmpi slt, %18, %19 : vector<128x1xi32>
    %cst_6 = arith.constant 0.000000e+00 : f32
    %21 = vector.broadcast %cst_6 : f32 to vector<128x1xf32>
    %22 = arith.select %20, %14, %21 : vector<128x1xi1>, vector<128x1xf32>
    %23 = vector.shape_cast %22 : vector<128x1xf32> to vector<1x128x1xf32>
    %cst_7 = arith.constant dense<0.000000e+00> : vector<1xf32>
    %24 = vector.multi_reduction <add>, %23, %cst_7 [1, 2] : vector<1x128x1xf32> to vector<1xf32>
    %25 = vector.shape_cast %24 : vector<1xf32> to vector<1x1x1xf32>
    %26 = vector.extract %25[0, 0, 0] : f32 from vector<1x1x1xf32>
    %27 = vector.broadcast %26 : f32 to vector<1x8x128xf32>
    %c0_8 = arith.constant 0 : index
    %c0_9 = arith.constant 0 : index
    %c0_10 = arith.constant 0 : index
    %28 = vector.load %arg3[%c0_8, %c0_9, %c0_10] : memref<1x8x128xf32, #tpu.memory_space<vmem>>, vector<1x8x128xf32>
    tpu.vector_store %arg3[%c0_8, %c0_9, %c0_10], %27 {strides = array<i32>} : memref<1x8x128xf32, #tpu.memory_space<vmem>>, vector<1x8x128xf32>,
    return
  }
  func.func @transform_0(%arg0: i32) -> (i32, i32) {
    %c0_i32 = arith.constant 0 : i32
    %c0_i32_0 = arith.constant 0 : i32
    return %arg0, %c0_i32 : i32, i32
  }
  func.func @transform_1(%arg0: i32) -> (i32, i32) {
    %c0_i32 = arith.constant 0 : i32
    %c0_i32_0 = arith.constant 0 : i32
    return %arg0, %c0_i32 : i32, i32
  }
  func.func @transform_2(%arg0: i32) -> (i32, i32, i32) {
    %c0_i32 = arith.constant 0 : i32
    %c0_i32_0 = arith.constant 0 : i32
    %c0_i32_1 = arith.constant 0 : i32
    return %arg0, %c0_i32, %c0_i32_0 : i32, i32, i32
  }
}

</mosaic_0001>

<bundles_post_ra>
// kernel: tpu_custom_call.1
= control target key start
LH: loop header
LB: loop body
LE: loop exit
PB: predicated region body
PF: predicated region fallthrough
CT: control target
= control target key end

     0   :  { %7 = vsyncpa [#allocation3], 0  ;;  %s1704_s0 = inlined_call_operand.vmem [shape: f32[200,50], index: 0, kind: input, shape index: {}]   ;;  %s1705_s1 = inlined_call_operand.vmem [shape: f32[200,50], index: 1, kind: input, shape index: {}]   ;;  %s1706_s2 = inlined_call_operand.hbm [shape: f32[2,8,128], index: 2, kind: output, shape index: {}]  }
   0x1   :  { %9 = vsyncpa [#allocation3 + $0x1], 0  ;;  %s1033_s9 = smov 0   ;;  %s1035_s10 = smov 0  }
   0x2   :  { %s1037_s11 = smov 0   ;;  %s1039_s12 = smov 0  }
   0x3 LB: > { %s1054_s13 = sadd.s32 4294967295, %s1015_s12   ;;  %s834_s14 = sadd.s32 4294967294, %s1015_s12   ;;  %s1015_s12 = sphi %s1039_s12, %s1713_s12   ;;  %s1011_s11 = sphi %s1037_s11, %s1712_s11   ;;  %s1007_s10 = sphi %s1035_s10, %s1711_s10   ;;  %s1003_s9 = sphi %s1033_s9, %s1710_s9  }
   0x4   : > { %s1058_s15 = sadd.s32 1, %s1015_s12   ;;  %s74_s16 = sadd.s32 1, %s1011_s11 }
   0x5   : > { %s71_s17 = ssub.s32 %s1015_s12, %s1058_s15  ;;  %p84_p0 = scmp.ne.s32.totalorder %s1011_s11, %s1007_s10 }
   0x6   : > { %p72_p1 = scmp.eq.s32.totalorder %s71_s17, 0  ;;  %p85_p2 = scmp.eq.s32.totalorder %s1054_s13, 1 }
   0x7   : > { %p90_p3 = scmp.ne.s32.totalorder %s1007_s10, %s1003_s9  ;;  %p91_p4 = scmp.eq.s32.totalorder %s834_s14, 1 }
   0x8   : > { %s1069_s18 = scalar_select %p72_p1, %s1011_s11, %s74_s16  }
   0x9   : > { %p1071_p5 = por %p85_p2, %p84_p0  ;;  %p1075_p6 = por %p91_p4, %p90_p3 }
   0xa   : > { %p837_p7 = scmp.ge.s32.totalorder %s1015_s12, 1  ;;  %p143_p8 = scmp.lt.s32.totalorder %s1015_s12, 3 }
   0xc   : > { %p144_p9 = pnand %p837_p7, %p143_p8 }
   0xd   : > { %s839_s21 = sshll.u32 (!%p144_p9), %s1054_s13, 4  ;;  %vm254_vm0 = vcmask (!%p144_p9), 408576   ;;  %s843_s29 = sshll.u32 (!%p144_p9), %s1054_s13, 7 }
   0xe   : > { %147 = sbr.rel (%p144_p9) target bundleno = 485 (0x1e5), region = 28  ;;  %p183_p10 = scmp.lt.s32.totalorder (!%p144_p9), %s839_s21, 24 }
   0xf   : > { %s175_s30 = sand.u32 (!%p144_p9), 1, %s1007_s10   ;;  %s1664_s14 = scalar_lea.hbm (!%p144_p9), %s1706_s2, %s843_s29 }
  0x10   : > { %s838_s3 = sshll.u32 (!%p144_p9), %s175_s30, 3  ;;  %s750_s16 = scalar_lea.sflag (!%p144_p9), [#allocation3], %s175_s30 }
  0x11   : > { %s177_s4 = scalar_lea.vmem (!%p144_p9), [#allocation2], %s838_s3 }
  0x12   : > { %s763_s5 = sshll.u32 (!%p144_p9), %s177_s4, 4  ;;  %s1657_s5 = int_to_ptr.vmem [resolvable:$true] %s763_s5 }
  0x13   : > { %s953_s17 = scalar_lea.vmem (!%p144_p9), %s1657_s5, 128 }
  0x14   : > { %p954_p11 = scmp.ne.s32.totalorder (!%p144_p9), %s1657_s5, %s953_s17 }
  0x15   : > { %s1715_s21 = smov (!%p183_p10, %s839_s21), 24 }
  0x16   : > { %s840_s22 = sshll.u32 %s1715_s21, 3  ;;  %p955_p12 = pnand %p954_p11, %p1071_p5 }
  0x17   : > { %s1085_s25 = scalar_lea.vmem %s1705_s1, %s840_s22  ;;  %s1090_s28 = scalar_lea.vmem %s1704_s0, %s840_s22 }
  0x18   : > { %v222_v0 = vld [vmem:[%s1085_s25] sm:$0xff]  ;;  %v223_v2 = vld [vmem:[%s1085_s25 + $0x8] sm:$0xff]  ;;  %v224_v8 = vld [vmem:[%s1085_s25 + $0x10] sm:$0xff]  ;;  %p956_p13 = pneg %p955_p12  ;;  %s1017_s21 = smov [#allocation2]  }
  0x19   : > { %v206_v1 = vld [vmem:[%s1090_s28] sm:$0xff]  ;;  %v415_v3 = vmul.f32 %v222_v0, %v222_v0  ;;  %v416_v5 = vmul.f32 %v223_v2, %v223_v2  ;;  %v207_v6 = vld [vmem:[%s1090_s28 + $0x8] sm:$0xff]  ;;  %v208_v9 = vld [vmem:[%s1090_s28 + $0x10] sm:$0xff]  ;;  %v417_v14 = vmul.f32 %v224_v8, %v224_v8  ;;  %s957_s22 = sshll.u32 %s1017_s21, 4  ;;  %s958_s22 = int_to_ptr.vmem [resolvable:$false] %s957_s22 }
  0x1a   : > { %v238_v4 = vmul.f32 %v206_v1, %v206_v1  ;;  %v239_v7 = vmul.f32 %v207_v6, %v207_v6  ;;  %v240_v15 = vmul.f32 %v208_v9, %v208_v9  ;;  %v225_v16 = vld [vmem:[%s1085_s25 + $0x18] sm:$0xff]  ;;  %v226_v22 = vld [vmem:[%s1085_s25 + $0x20] sm:$0xff]  ;;  %v227_v28 = vld [vmem:[%s1085_s25 + $0x28] sm:$0xff]  ;;  %s959_s23 = scalar_lea.vmem %s958_s22, 256  ;;  %p960_p0 = scmp.lt.s32.totalorder %s1657_s5, %s958_s22 }
  0x1b   : > { %v431_v10 = vsel %vm254_vm0, %v415_v3, 0.0  ;;  %v434_v12 = vsel %vm254_vm0, %v416_v5, 0.0  ;;  %v209_v17 = vld [vmem:[%s1090_s28 + $0x18] sm:$0xff]  ;;  %v437_v18 = vsel %vm254_vm0, %v417_v14, 0.0  ;;  %v418_v20 = vmul.f32 %v225_v16, %v225_v16  ;;  %v210_v23 = vld [vmem:[%s1090_s28 + $0x20] sm:$0xff]  ;;  %v211_v29 = vld [vmem:[%s1090_s28 + $0x28] sm:$0xff]  ;;  %p961_p1 = scmp.lt.s32.totalorder %s959_s23, %s953_s17 }
  0x1c   : > { %v255_v11 = vsel %vm254_vm0, %v238_v4, 0.0  ;;  %432 = vadd.xlane.f32.xlu1 %v431_v10  ;;  %v258_v13 = vsel %vm254_vm0, %v239_v7, 0.0  ;;  %v261_v19 = vsel %vm254_vm0, %v240_v15, 0.0  ;;  %v241_v21 = vmul.f32 %v209_v17, %v209_v17  ;;  %v228_v34 = vld [vmem:[%s1085_s25 + $0x30] sm:$0xff]  ;;  %v229_v40 = vld [vmem:[%s1085_s25 + $0x38] sm:$0xff]  ;;  %v230_v46 = vld [vmem:[%s1085_s25 + $0x40] sm:$0xff] }
  0x1d   : > { %256 = vadd.xlane.f32.xlu0 %v255_v11  ;;  %v440_v24 = vsel %vm254_vm0, %v418_v20, 0.0  ;;  %v419_v26 = vmul.f32 %v226_v22, %v226_v22  ;;  %v242_v27 = vmul.f32 %v210_v23, %v210_v23  ;;  %v420_v32 = vmul.f32 %v227_v28, %v227_v28  ;;  %v212_v35 = vld [vmem:[%s1090_s28 + $0x30] sm:$0xff]  ;;  %v213_v41 = vld [vmem:[%s1090_s28 + $0x38] sm:$0xff]  ;;  %v214_v47 = vld [vmem:[%s1090_s28 + $0x40] sm:$0xff]  ;;  %p962_p2 = por %p961_p1, %p960_p0 }
  0x1e   : > { %v264_v25 = vsel %vm254_vm0, %v241_v21, 0.0  ;;  %v243_v33 = vmul.f32 %v211_v29, %v211_v29  ;;  %v421_v38 = vmul.f32 %v228_v34, %v228_v34  ;;  %v244_v39 = vmul.f32 %v212_v35, %v212_v35  ;;  %v231_v52 = vld [vmem:[%s1085_s25 + $0x48] sm:$0xff]  ;;  %v232_v58 = vld [vmem:[%s1085_s25 + $0x50] sm:$0xff]  ;;  %v233_v0 = vld [vmem:[%s1085_s25 + $0x58] sm:$0xff] }
  0x1f   : > { %v443_v30 = vsel %vm254_vm0, %v419_v26, 0.0  ;;  %v267_v31 = vsel %vm254_vm0, %v242_v27, 0.0  ;;  %v446_v36 = vsel %vm254_vm0, %v420_v32, 0.0  ;;  %v422_v44 = vmul.f32 %v229_v40, %v229_v40  ;;  %v215_v53 = vld [vmem:[%s1090_s28 + $0x48] sm:$0xff]  ;;  %v216_v59 = vld [vmem:[%s1090_s28 + $0x50] sm:$0xff]  ;;  %v217_v1 = vld [vmem:[%s1090_s28 + $0x58] sm:$0xff]  ;;  %p963_p3 = pnand %p962_p2, %p956_p13 }
  0x20   : > { %435 = vadd.xlane.f32.xlu1 %v434_v12  ;;  %v270_v37 = vsel %vm254_vm0, %v243_v33, 0.0  ;;  %v449_v42 = vsel %vm254_vm0, %v421_v38, 0.0  ;;  %v273_v43 = vsel %vm254_vm0, %v244_v39, 0.0  ;;  %v245_v45 = vmul.f32 %v213_v41, %v213_v41  ;;  %v234_v6 = vld [vmem:[%s1085_s25 + $0x60] sm:$0xff]  ;;  %v235_v12 = vld [vmem:[%s1085_s25 + $0x68] sm:$0xff] }
  0x21   : > { %259 = vadd.xlane.f32.xlu0 %v258_v13  ;;  %v452_v48 = vsel %vm254_vm0, %v422_v44, 0.0  ;;  %v423_v50 = vmul.f32 %v230_v46, %v230_v46  ;;  %v246_v51 = vmul.f32 %v214_v47, %v214_v47  ;;  %v424_v56 = vmul.f32 %v231_v52, %v231_v52  ;;  %v218_v7 = vld [vmem:[%s1090_s28 + $0x60] sm:$0xff]  ;;  %v219_v13 = vld [vmem:[%s1090_s28 + $0x68] sm:$0xff] }
  0x22   : > { %v276_v49 = vsel %vm254_vm0, %v245_v45, 0.0  ;;  %v247_v57 = vmul.f32 %v215_v53, %v215_v53  ;;  %v425_v62 = vmul.f32 %v232_v58, %v232_v58  ;;  %v248_v63 = vmul.f32 %v216_v59, %v216_v59 }
  0x23   : > { %v455_v54 = vsel %vm254_vm0, %v423_v50, 0.0  ;;  %v279_v55 = vsel %vm254_vm0, %v246_v51, 0.0  ;;  %v458_v60 = vsel %vm254_vm0, %v424_v56, 0.0  ;;  %v426_v4 = vmul.f32 %v233_v0, %v233_v0 }
  0x24   : > { %438 = vadd.xlane.f32.xlu1 %v437_v18  ;;  %v282_v61 = vsel %vm254_vm0, %v247_v57, 0.0  ;;  %v461_v2 = vsel %vm254_vm0, %v425_v62, 0.0  ;;  %v285_v3 = vsel %vm254_vm0, %v248_v63, 0.0  ;;  %v249_v5 = vmul.f32 %v217_v1, %v217_v1  ;;  %v236_v18 = vld [vmem:[%s1085_s25 + $0x70] sm:$0xff] }
  0x25   : > { %262 = vadd.xlane.f32.xlu0 %v261_v19  ;;  %v464_v8 = vsel %vm254_vm0, %v426_v4, 0.0  ;;  %v427_v10 = vmul.f32 %v234_v6, %v234_v6  ;;  %v250_v11 = vmul.f32 %v218_v7, %v218_v7  ;;  %v428_v16 = vmul.f32 %v235_v12, %v235_v12  ;;  %v220_v19 = vld [vmem:[%s1090_s28 + $0x70] sm:$0xff] }
  0x26   : > { %v288_v9 = vsel %vm254_vm0, %v249_v5, 0.0  ;;  %v251_v17 = vmul.f32 %v219_v13, %v219_v13  ;;  %v429_v22 = vmul.f32 %v236_v18, %v236_v18  ;;  %v252_v23 = vmul.f32 %v220_v19, %v220_v19 }
  0x27   : > { %v467_v14 = vsel %vm254_vm0, %v427_v10, 0.0  ;;  %v291_v15 = vsel %vm254_vm0, %v250_v11, 0.0  ;;  %v470_v20 = vsel %vm254_vm0, %v428_v16, 0.0  ;;  %v640_v32 = vlaneseq }
  0x28   : > { %441 = vadd.xlane.f32.xlu1 %v440_v24  ;;  %v294_v21 = vsel %vm254_vm0, %v251_v17, 0.0  ;;  %v237_v24 = vld [vmem:[%s1085_s25 + $0x78] sm:$0xff]  ;;  %v473_v26 = vsel %vm254_vm0, %v429_v22, 0.0  ;;  %v297_v27 = vsel %vm254_vm0, %v252_v23, 0.0  ;;  %v1159_v34 = vstv %s843_s29 }
  0x29   : > { %265 = vadd.xlane.f32.xlu0 %v264_v25  ;;  %v221_v25 = vld [vmem:[%s1090_s28 + $0x78] sm:$0xff]  ;;  %v430_v28 = vmul.f32 %v237_v24, %v237_v24  ;;  %v641_v33 = vshrl.u32 %v640_v32, 7 }
  0x2a   : > { %v253_v29 = vmul.f32 %v221_v25, %v221_v25 }
  0x2b   : > { %v642_v38 = vadd.s32 8, %v641_v33  ;;  %v643_v39 = vadd.s32 16, %v641_v33  ;;  %v644_v40 = vadd.s32 24, %v641_v33  ;;  %v645_v41 = vadd.s32 32, %v641_v33 }
  0x2c   : > { %444 = vadd.xlane.f32.xlu1 %v443_v30  ;;  %v476_v30 = vsel %vm254_vm0, %v430_v28, 0.0  ;;  %v647_v45 = vadd.s32 48, %v641_v33  ;;  %v648_v46 = vadd.s32 56, %v641_v33  ;;  %v649_v47 = vadd.s32 64, %v641_v33 }
  0x2d   : > { %268 = vadd.xlane.f32.xlu0 %v267_v31  ;;  %v300_v31 = vsel %vm254_vm0, %v253_v29, 0.0  ;;  %v652_v50 = vadd.s32 88, %v641_v33  ;;  %v653_v51 = vadd.s32 96, %v641_v33  ;;  %v1176_v52 = vadd.s32 %v1159_v34, %v642_v38 }
  0x2e   : > { %v654_v53 = vadd.s32 104, %v641_v33  ;;  %v1183_v56 = vadd.s32 %v1159_v34, %v644_v40  ;;  %v1186_v57 = vadd.s32 %v1159_v34, %v645_v41  ;;  %v1199_v62 = vadd.s32 %v1159_v34, %v648_v46 }
  0x2f   : > { %v1202_v63 = vadd.s32 %v1159_v34, %v649_v47  ;;  %v1218_v4 = vadd.s32 120, %v641_v33  ;;  %vm675_vm14 = vcmp.lt.s32.totalorder %v1176_v52, 200 }
  0x30   : > { %447 = vadd.xlane.f32.xlu1 %v446_v36  ;;  %v1221_v5 = vadd.s32 %v1159_v34, %v654_v53 }
  0x31   : > { %271 = vadd.xlane.f32.xlu0 %v270_v37  ;;  %v1167_v37 = vadd.s32 %v1159_v34, %v641_v33 }
  0x33   : > { %vm674_vm11 = vcmp.lt.s32.totalorder %v1167_v37, 200 }
  0x34   : > { %450 = vadd.xlane.f32.xlu1 %v449_v42  ;;  %v646_v42 = vadd.s32 40, %v641_v33 }
  0x35   : > { %274 = vadd.xlane.f32.xlu0 %v273_v43 }
  0x36   : > { %v1189_v58 = vadd.s32 %v1159_v34, %v646_v42 }
  0x38   : > { %453 = vadd.xlane.f32.xlu1 %v452_v48  ;;  %v650_v48 = vadd.s32 72, %v641_v33 }
  0x39   : > { %277 = vadd.xlane.f32.xlu0 %v276_v49  ;;  %v651_v49 = vadd.s32 80, %v641_v33 }
  0x3a   : > { %v1205_v0 = vadd.s32 %v1159_v34, %v650_v48 }
  0x3b   : > { %v1209_v1 = vadd.s32 %v1159_v34, %v651_v49 }
  0x3c   : > { %456 = vadd.xlane.f32.xlu1 %v455_v54  ;;  %v655_v54 = vadd.s32 112, %v641_v33 }
  0x3d   : > { %280 = vadd.xlane.f32.xlu0 %v279_v55  ;;  %v1180_v55 = vadd.s32 %v1159_v34, %v643_v39 }
  0x3e   : > { %v1224_v6 = vadd.s32 %v1159_v34, %v655_v54 }
  0x40   : > { %459 = vadd.xlane.f32.xlu1 %v458_v60 }
  0x41   : > { %283 = vadd.xlane.f32.xlu0 %v282_v61  ;;  %v1196_v61 = vadd.s32 %v1159_v34, %v647_v45 }
  0x44   : > { %462 = vadd.xlane.f32.xlu1 %v461_v2  ;;  %v1212_v2 = vadd.s32 %v1159_v34, %v652_v50 }
  0x45   : > { %286 = vadd.xlane.f32.xlu0 %v285_v3  ;;  %v1215_v3 = vadd.s32 %v1159_v34, %v653_v51 }
  0x48   : > { %465 = vadd.xlane.f32.xlu1 %v464_v8 }
  0x49   : > { %289 = vadd.xlane.f32.xlu0 %v288_v9 }
  0x4c   : > { %468 = vadd.xlane.f32.xlu1 %v467_v14 }
  0x4d   : > { %292 = vadd.xlane.f32.xlu0 %v291_v15 }
  0x50   : > { %471 = vadd.xlane.f32.xlu1 %v470_v20 }
  0x51   : > { %295 = vadd.xlane.f32.xlu0 %v294_v21 }
  0x54   : > { %474 = vadd.xlane.f32.xlu1 %v473_v26 }
  0x55   : > { %298 = vadd.xlane.f32.xlu0 %v297_v27 }
  0x58   : > { %477 = vadd.xlane.f32.xlu1 %v476_v30 }
  0x59   : > { %301 = vadd.xlane.f32.xlu0 %v300_v31 }
  0xa9   : > { %v1161_v35 = vpop.xlane.xlu1 %432 }
  0xaa   : > { %v1163_v36 = vpop.xlane.xlu0 %256  ;;  %889 = vrsqrt.f32 %v1161_v35  ;;  %vm481_vm1 = vcmp.eq.f32.partialorder %v1161_v35, inf  ;;  %vm483_vm2 = vcmp.eq.f32.partialorder %v1161_v35, 0.0  ;;  %v484_v8 = vand.u32 2147483648, %v1161_v35 }
  0xab   : > { %891 = vrsqrt.f32 %v1163_v36  ;;  %vm305_vm3 = vcmp.eq.f32.partialorder %v1163_v36, inf  ;;  %vm307_vm4 = vcmp.eq.f32.partialorder %v1163_v36, 0.0  ;;  %v308_v11 = vand.u32 2147483648, %v1163_v36 }
  0xad   : > { %v1170_v43 = vpop.xlane.xlu1 %435 }
  0xae   : > { %v1172_v44 = vpop.xlane.xlu0 %259  ;;  %893 = vrsqrt.f32 %v1170_v43  ;;  %vm488_vm5 = vcmp.eq.f32.partialorder %v1170_v43, inf  ;;  %vm490_vm6 = vcmp.eq.f32.partialorder %v1170_v43, 0.0  ;;  %v491_v15 = vand.u32 2147483648, %v1170_v43 }
  0xaf   : > { %895 = vrsqrt.f32 %v1172_v44  ;;  %vm312_vm7 = vcmp.eq.f32.partialorder %v1172_v44, inf  ;;  %vm314_vm8 = vcmp.eq.f32.partialorder %v1172_v44, 0.0  ;;  %v315_v20 = vand.u32 2147483648, %v1172_v44 }
  0xb1   : > { %v1191_v59 = vpop.xlane.xlu1 %438 }
  0xb2   : > { %v1193_v60 = vpop.xlane.xlu0 %262  ;;  %897 = vrsqrt.f32 %v1191_v59  ;;  %vm495_vm9 = vcmp.eq.f32.partialorder %v1191_v59, inf  ;;  %vm497_vm10 = vcmp.eq.f32.partialorder %v1191_v59, 0.0  ;;  %v498_v24 = vand.u32 2147483648, %v1191_v59 }
  0xb3   : > { %899 = vrsqrt.f32 %v1193_v60  ;;  %vm319_vm12 = vcmp.eq.f32.partialorder %v1193_v60, inf  ;;  %vm321_vm13 = vcmp.eq.f32.partialorder %v1193_v60, 0.0  ;;  %v322_v30 = vand.u32 2147483648, %v1193_v60 }
  0xb4   : > { %v890_v7 = vpop.eup %889 }
  0xb5   : > { %v892_v9 = vpop.eup %891  ;;  %v480_v10 = vmul.f32 %v890_v7, %v1161_v35  ;;  %v1234_v12 = vpop.xlane.xlu1 %441 }
  0xb6   : > { %v1236_v13 = vpop.xlane.xlu0 %265  ;;  %v304_v14 = vmul.f32 %v892_v9, %v1163_v36  ;;  %901 = vrsqrt.f32 %v1234_v12  ;;  %vm502_vm15 = vcmp.eq.f32.partialorder %v1234_v12, inf  ;;  %vm504_vm0 = vcmp.eq.f32.partialorder %v1234_v12, 0.0 }
  0xb7   : > { %v482_v16 = vsel %vm481_vm1, %v1161_v35, %v480_v10  ;;  %903 = vrsqrt.f32 %v1236_v13  ;;  %vm706_vm1 = vcmask 7168   ;;  %v505_v40 = vand.u32 2147483648, %v1234_v12 }
  0xb8   : > { %v894_v17 = vpop.eup %893  ;;  %v485_v18 = vsel %vm483_vm2, %v484_v8, %v482_v16  ;;  %v306_v19 = vsel %vm305_vm3, %v1163_v36, %v304_v14  ;;  %vm676_vm2 = vcmp.lt.s32.totalorder %v1180_v55, 200  ;;  %vm326_vm3 = vcmp.eq.f32.partialorder %v1236_v13, inf }
  0xb9   : > { %v896_v21 = vpop.eup %895  ;;  %v309_v22 = vsel %vm307_vm4, %v308_v11, %v306_v19  ;;  %v487_v23 = vmul.f32 %v894_v17, %v1170_v43  ;;  %v1258_v25 = vpop.xlane.xlu1 %444  ;;  %vm328_vm4 = vcmp.eq.f32.partialorder %v1236_v13, 0.0  ;;  %v329_v46 = vand.u32 2147483648, %v1236_v13 }
  0xba   : > { %v1260_v26 = vpop.xlane.xlu0 %268  ;;  %v591_v27 = vsub.f32 %v309_v22, %v485_v18  ;;  %v311_v28 = vmul.f32 %v896_v21, %v1172_v44  ;;  %905 = vrsqrt.f32 %v1258_v25  ;;  %v512_v11 = vand.u32 2147483648, %v1258_v25 }
  0xbb   : > { %v489_v29 = vsel %vm488_vm5, %v1170_v43, %v487_v23  ;;  %907 = vrsqrt.f32 %v1260_v26  ;;  %vm509_vm5 = vcmp.eq.f32.partialorder %v1258_v25, inf  ;;  %v336_v19 = vand.u32 2147483648, %v1260_v26 }
  0xbc   : > { %v898_v31 = vpop.eup %897  ;;  %v492_v32 = vsel %vm490_vm6, %v491_v15, %v489_v29  ;;  %v313_v33 = vsel %vm312_vm7, %v1172_v44, %v311_v28  ;;  %v607_v36 = vadd.f32 1.0, %v591_v27  ;;  %vm511_vm6 = vcmp.eq.f32.partialorder %v1258_v25, 0.0 }
  0xbd   : > { %v900_v35 = vpop.eup %899  ;;  %v316_v38 = vsel %vm314_vm8, %v315_v20, %v313_v33  ;;  %v494_v39 = vmul.f32 %v898_v31, %v1191_v59  ;;  %v1284_v41 = vpop.xlane.xlu1 %447  ;;  %vm677_vm7 = vcmp.lt.s32.totalorder %v1183_v56, 200  ;;  %vm333_vm8 = vcmp.eq.f32.partialorder %v1260_v26, inf }
  0xbe   : > { %v1286_v42 = vpop.xlane.xlu0 %271  ;;  %v592_v43 = vsub.f32 %v316_v38, %v492_v32  ;;  %v318_v45 = vmul.f32 %v900_v35, %v1193_v60  ;;  %909 = vrsqrt.f32 %v1284_v41  ;;  %v623_v53 = vmax.f32 %v607_v36, 0.0 }
  0xbf   : > { %v496_v44 = vsel %vm495_vm9, %v1191_v59, %v494_v39  ;;  %911 = vrsqrt.f32 %v1286_v42  ;;  %vm335_vm9 = vcmp.eq.f32.partialorder %v1260_v26, 0.0 }
  0xc0   : > { %v902_v47 = vpop.eup %901  ;;  %v608_v48 = vadd.f32 1.0, %v592_v43  ;;  %v499_v49 = vsel %vm497_vm10, %v498_v24, %v496_v44  ;;  %v320_v50 = vsel %vm319_vm12, %v1193_v60, %v318_v45  ;;  %v690_v21 = vsel %vm674_vm11, %v623_v53, 0.0 }
  0xc1   : > { %v904_v51 = vpop.eup %903  ;;  %v323_v54 = vsel %vm321_vm13, %v322_v30, %v320_v50  ;;  %v501_v7 = vmul.f32 %v902_v47, %v1234_v12  ;;  %v1309_v8 = vpop.xlane.xlu1 %450  ;;  %vm678_vm10 = vcmp.lt.s32.totalorder %v1186_v57, 200  ;;  %vm516_vm12 = vcmp.eq.f32.partialorder %v1284_v41, inf }
  0xc2   : > { %v1311_v59 = vpop.xlane.xlu0 %274  ;;  %v593_v9 = vsub.f32 %v323_v54, %v499_v49  ;;  %v325_v10 = vmul.f32 %v904_v51, %v1236_v13  ;;  %v624_v14 = vmax.f32 %v608_v48, 0.0  ;;  %913 = vrsqrt.f32 %v1309_v8 }
  0xc3   : > { %v503_v60 = vsel %vm502_vm15, %v1234_v12, %v501_v7  ;;  %vm518_vm13 = vcmp.eq.f32.partialorder %v1284_v41, 0.0  ;;  %v519_v30 = vand.u32 2147483648, %v1284_v41  ;;  %915 = vrsqrt.f32 %v1311_v59 }
  0xc4   : > { %v906_v15 = vpop.eup %905  ;;  %v609_v16 = vadd.f32 1.0, %v593_v9  ;;  %v506_v17 = vsel %vm504_vm0, %v505_v40, %v503_v60  ;;  %v327_v18 = vsel %vm326_vm3, %v1236_v13, %v325_v10  ;;  %v691_v37 = vsel %vm675_vm14, %v624_v14, 0.0 }
  0xc5   : > { %v908_v20 = vpop.eup %907  ;;  %v330_v22 = vsel %vm328_vm4, %v329_v46, %v327_v18  ;;  %v508_v23 = vmul.f32 %v906_v15, %v1258_v25  ;;  %v1334_v12 = vpop.xlane.xlu1 %453  ;;  %v707_v32 = vsel %vm706_vm1, %v690_v21, 0.0  ;;  %vm340_vm11 = vcmp.eq.f32.partialorder %v1286_v42, inf }
  0xc6   : > { %v1336_v24 = vpop.xlane.xlu0 %277  ;;  %v625_v27 = vmax.f32 %v609_v16, 0.0  ;;  %v594_v28 = vsub.f32 %v330_v22, %v506_v17  ;;  %v332_v29 = vmul.f32 %v908_v20, %v1260_v26  ;;  %vm342_vm14 = vcmp.eq.f32.partialorder %v1286_v42, 0.0 }
  0xc7   : > { %v510_v13 = vsel %vm509_vm5, %v1258_v25, %v508_v23  ;;  %v708_v25 = vsel %vm706_vm1, %v691_v37, 0.0  ;;  %vm523_vm15 = vcmp.eq.f32.partialorder %v1309_v8, inf  ;;  %917 = vrsqrt.f32 %v1334_v12 }
  0xc8   : > { %v910_v31 = vpop.eup %909  ;;  %v610_v33 = vadd.f32 1.0, %v594_v28  ;;  %v513_v35 = vsel %vm511_vm6, %v512_v11, %v510_v13  ;;  %v334_v52 = vsel %vm333_vm8, %v1260_v26, %v332_v29  ;;  %v692_v36 = vsel %vm676_vm2, %v625_v27, 0.0 }
  0xc9   : > { %v337_v38 = vsel %vm335_vm9, %v336_v19, %v334_v52  ;;  %v515_v39 = vmul.f32 %v910_v31, %v1284_v41  ;;  %v1359_v40 = vpop.xlane.xlu1 %456  ;;  %v912_v46 = vpop.eup %911  ;;  %v343_v26 = vand.u32 2147483648, %v1286_v42  ;;  %v710_v47 = vsel %vm706_vm1, %v692_v36, 0.0 }
  0xca   : > { %v1361_v43 = vpop.xlane.xlu0 %280  ;;  %v626_v45 = vmax.f32 %v610_v33, 0.0  ;;  %v595_v44 = vsub.f32 %v337_v38, %v513_v35  ;;  %vm679_vm0 = vcmp.lt.s32.totalorder %v1189_v58, 200  ;;  %v339_v50 = vmul.f32 %v912_v46, %v1286_v42 }
  0xcb   : > { %v517_v55 = vsel %vm516_vm12, %v1284_v41, %v515_v39  ;;  %v709_v53 = vadd.f32 %v708_v25, %v707_v32  ;;  %vm525_vm2 = vcmp.eq.f32.partialorder %v1309_v8, 0.0  ;;  %919 = vrsqrt.f32 %v1336_v24 }
  0xcc   : > { %v693_v48 = vsel %vm677_vm7, %v626_v45, 0.0  ;;  %v611_v49 = vadd.f32 1.0, %v595_v44  ;;  %v914_v51 = vpop.eup %913  ;;  %v520_v54 = vsel %vm518_vm13, %v519_v30, %v517_v55  ;;  %v341_v10 = vsel %vm340_vm11, %v1286_v42, %v339_v50 }
  0xcd   : > { %v1380_v7 = vpop.xlane.xlu1 %459  ;;  %v522_v11 = vmul.f32 %v914_v51, %v1309_v8  ;;  %v526_v14 = vand.u32 2147483648, %v1309_v8  ;;  %v711_v60 = vadd.f32 %v710_v47, %v709_v53  ;;  %v712_v41 = vsel %vm706_vm1, %v693_v48, 0.0  ;;  %v916_v19 = vpop.eup %915 }
  0xce   : > { %v1382_v9 = vpop.xlane.xlu0 %283  ;;  %v627_v56 = vmax.f32 %v611_v49, 0.0  ;;  %v344_v15 = vsel %vm342_vm14, %v343_v26, %v341_v10  ;;  %vm347_vm3 = vcmp.eq.f32.partialorder %v1311_v59, inf  ;;  %921 = vrsqrt.f32 %v1359_v40 }
  0xcf   : > { %v596_v17 = vsub.f32 %v344_v15, %v520_v54  ;;  %v524_v18 = vsel %vm523_vm15, %v1309_v8, %v522_v11  ;;  %vm349_vm4 = vcmp.eq.f32.partialorder %v1311_v59, 0.0  ;;  %v350_v20 = vand.u32 2147483648, %v1311_v59 }
  0xd0   : > { %v694_v16 = vsel %vm678_vm10, %v627_v56, 0.0  ;;  %vm530_vm5 = vcmp.eq.f32.partialorder %v1334_v12, inf  ;;  %vm532_vm6 = vcmp.eq.f32.partialorder %v1334_v12, 0.0  ;;  %v713_v21 = vadd.f32 %v712_v41, %v711_v60 }
  0xd1   : > { %v1403_v42 = vpop.xlane.xlu1 %462  ;;  %v612_v22 = vadd.f32 1.0, %v596_v17  ;;  %v346_v23 = vmul.f32 %v916_v19, %v1311_v59  ;;  %v533_v27 = vand.u32 2147483648, %v1334_v12  ;;  %v714_v28 = vsel %vm706_vm1, %v694_v16, 0.0  ;;  %v918_v30 = vpop.eup %917 }
  0xd2   : > { %v1405_v57 = vpop.xlane.xlu0 %286  ;;  %v527_v29 = vsel %vm525_vm2, %v526_v14, %v524_v18  ;;  %vm354_vm7 = vcmp.eq.f32.partialorder %v1336_v24, inf  ;;  %923 = vrsqrt.f32 %v1361_v43  ;;  %vm680_vm8 = vcmp.lt.s32.totalorder %v1196_v61, 200 }
  0xd3   : > { %v628_v37 = vmax.f32 %v612_v22, 0.0  ;;  %v348_v13 = vsel %vm347_vm3, %v1311_v59, %v346_v23  ;;  %vm356_vm9 = vcmp.eq.f32.partialorder %v1336_v24, 0.0  ;;  %925 = vrsqrt.f32 %v1380_v7 }
  0xd4   : > { %v351_v8 = vsel %vm349_vm4, %v350_v20, %v348_v13  ;;  %v357_v31 = vand.u32 2147483648, %v1336_v24  ;;  %vm537_vm10 = vcmp.eq.f32.partialorder %v1359_v40, inf  ;;  %927 = vrsqrt.f32 %v1382_v9 }
  0xd5   : > { %v1425_v32 = vpop.xlane.xlu1 %465  ;;  %v715_v35 = vadd.f32 %v714_v28, %v713_v21  ;;  %v597_v52 = vsub.f32 %v351_v8, %v527_v29  ;;  %v529_v36 = vmul.f32 %v918_v30, %v1334_v12  ;;  %vm539_vm12 = vcmp.eq.f32.partialorder %v1359_v40, 0.0  ;;  %v920_v38 = vpop.eup %919 }
  0xd6   : > { %v1427_v33 = vpop.xlane.xlu0 %289  ;;  %v695_v59 = vsel %vm679_vm0, %v628_v37, 0.0  ;;  %v540_v39 = vand.u32 2147483648, %v1359_v40  ;;  %vm361_vm13 = vcmp.eq.f32.partialorder %v1361_v43, inf  ;;  %929 = vrsqrt.f32 %v1403_v42 }
  0xd7   : > { %v613_v25 = vadd.f32 1.0, %v597_v52  ;;  %v531_v45 = vsel %vm530_vm5, %v1334_v12, %v529_v36  ;;  %v353_v44 = vmul.f32 %v920_v38, %v1336_v24  ;;  %vm363_vm11 = vcmp.eq.f32.partialorder %v1361_v43, 0.0 }
  0xd8   : > { %v534_v46 = vsel %vm532_vm6, %v533_v27, %v531_v45  ;;  %v364_v58 = vand.u32 2147483648, %v1361_v43  ;;  %vm544_vm14 = vcmp.eq.f32.partialorder %v1380_v7, inf  ;;  %vm546_vm15 = vcmp.eq.f32.partialorder %v1380_v7, 0.0  ;;  %v922_v47 = vpop.eup %921 }
  0xd9   : > { %v1446_v55 = vpop.xlane.xlu1 %468  ;;  %v716_v48 = vsel %vm706_vm1, %v695_v59, 0.0  ;;  %v355_v49 = vsel %vm354_vm7, %v1336_v24, %v353_v44  ;;  %v547_v12 = vand.u32 2147483648, %v1380_v7  ;;  %931 = vrsqrt.f32 %v1405_v57 }
  0xda   : > { %v1448_v26 = vpop.xlane.xlu0 %292  ;;  %v629_v50 = vmax.f32 %v613_v25, 0.0  ;;  %v358_v51 = vsel %vm356_vm9, %v357_v31, %v355_v49  ;;  %v536_v53 = vmul.f32 %v922_v47, %v1359_v40  ;;  %vm368_vm0 = vcmp.eq.f32.partialorder %v1382_v9, inf }
  0xdb   : > { %vm681_vm2 = vcmp.lt.s32.totalorder %v1199_v62, 200  ;;  %v598_v54 = vsub.f32 %v358_v51, %v534_v46  ;;  %vm370_vm3 = vcmp.eq.f32.partialorder %v1382_v9, 0.0  ;;  %v371_v56 = vand.u32 2147483648, %v1382_v9 }
  0xdc   : > { %933 = vrsqrt.f32 %v1425_v32  ;;  %v924_v10 = vpop.eup %923  ;;  %v1464_v11 = vadd.f32 %v716_v48, %v715_v35  ;;  %v538_v24 = vsel %vm537_vm10, %v1359_v40, %v536_v53  ;;  %vm551_vm4 = vcmp.eq.f32.partialorder %v1403_v42, inf }
  0xdd   : > { %vm553_vm5 = vcmp.eq.f32.partialorder %v1403_v42, 0.0  ;;  %v926_v14 = vpop.eup %925  ;;  %v360_v60 = vmul.f32 %v924_v10, %v1361_v43  ;;  %v554_v41 = vand.u32 2147483648, %v1403_v42  ;;  %vm375_vm6 = vcmp.eq.f32.partialorder %v1405_v57, inf  ;;  %v1475_v15 = vpop.xlane.xlu1 %471 }
  0xde   : > { %935 = vrsqrt.f32 %v1427_v33  ;;  %v928_v16 = vpop.eup %927  ;;  %v696_v17 = vsel %vm680_vm8, %v629_v50, 0.0  ;;  %v614_v18 = vadd.f32 1.0, %v598_v54  ;;  %v541_v19 = vsel %vm539_vm12, %v540_v39, %v538_v24  ;;  %v1482_v21 = vpop.xlane.xlu0 %295 }
  0xdf   : > { %v543_v20 = vmul.f32 %v926_v14, %v1380_v7  ;;  %v362_v22 = vsel %vm361_vm13, %v1361_v43, %v360_v60  ;;  %v367_v23 = vmul.f32 %v928_v16, %v1382_v9  ;;  %vm377_vm7 = vcmp.eq.f32.partialorder %v1405_v57, 0.0 }
  0xe0   : > { %937 = vrsqrt.f32 %v1446_v55  ;;  %v930_v61 = vpop.eup %929  ;;  %v365_v27 = vsel %vm363_vm11, %v364_v58, %v362_v22  ;;  %v378_v28 = vand.u32 2147483648, %v1405_v57  ;;  %vm558_vm8 = vcmp.eq.f32.partialorder %v1425_v32, inf }
  0xe1   : > { %v545_v40 = vsel %vm544_vm14, %v1380_v7, %v543_v20  ;;  %v1498_v29 = vsel %vm706_vm1, %v696_v17, 0.0  ;;  %v599_v37 = vsub.f32 %v365_v27, %v541_v19  ;;  %v369_v43 = vsel %vm368_vm0, %v1382_v9, %v367_v23  ;;  %v1513_v7 = vpop.xlane.xlu1 %474 }
  0xe2   : > { %v548_v13 = vsel %vm546_vm15, %v547_v12, %v545_v40  ;;  %v630_v30 = vmax.f32 %v614_v18, 0.0  ;;  %v372_v8 = vsel %vm370_vm3, %v371_v56, %v369_v43  ;;  %v550_v31 = vmul.f32 %v930_v61, %v1403_v42  ;;  %v1521_v39 = vpop.xlane.xlu0 %298 }
  0xe3   : > { %vm560_vm9 = vcmp.eq.f32.partialorder %v1425_v32, 0.0  ;;  %939 = vrsqrt.f32 %v1448_v26  ;;  %v932_v35 = vpop.eup %931  ;;  %v600_v52 = vsub.f32 %v372_v8, %v548_v13  ;;  %v561_v36 = vand.u32 2147483648, %v1425_v32 }
  0xe4   : > { %vm382_vm10 = vcmp.eq.f32.partialorder %v1427_v33, inf  ;;  %vm384_vm12 = vcmp.eq.f32.partialorder %v1427_v33, 0.0  ;;  %v552_v9 = vsel %vm551_vm4, %v1403_v42, %v550_v31  ;;  %v374_v38 = vmul.f32 %v932_v35, %v1405_v57 }
  0xe5   : > { %v385_v59 = vand.u32 2147483648, %v1427_v33  ;;  %941 = vrsqrt.f32 %v1475_v15  ;;  %v615_v45 = vadd.f32 1.0, %v599_v37  ;;  %v555_v44 = vsel %vm553_vm5, %v554_v41, %v552_v9  ;;  %v1551_v56 = vpop.xlane.xlu1 %477 }
  0xe6   : > { %v934_v25 = vpop.eup %933  ;;  %vm565_vm13 = vcmp.eq.f32.partialorder %v1446_v55, inf  ;;  %vm567_vm11 = vcmp.eq.f32.partialorder %v1446_v55, 0.0  ;;  %vm682_vm14 = vcmp.lt.s32.totalorder %v1202_v63, 200  ;;  %vm683_vm15 = vcmp.lt.s32.totalorder %v1205_v0, 200  ;;  %v1559_v60 = vpop.xlane.xlu0 %301 }
  0xe7   : > { %v1531_v46 = vsel %vm681_vm2, %v630_v30, 0.0  ;;  %v376_v58 = vsel %vm375_vm6, %v1405_v57, %v374_v38  ;;  %v557_v47 = vmul.f32 %v934_v25, %v1425_v32  ;;  %v568_v42 = vand.u32 2147483648, %v1446_v55 }
  0xe8   : > { %v936_v48 = vpop.eup %935  ;;  %v616_v49 = vadd.f32 1.0, %v600_v52  ;;  %v379_v12 = vsel %vm377_vm7, %v378_v28, %v376_v58  ;;  %vm389_vm0 = vcmp.eq.f32.partialorder %v1448_v26, inf  ;;  %943 = vrsqrt.f32 %v1482_v21 }
  0xe9   : > { %vm684_vm2 = vcmp.lt.s32.totalorder %v1209_v1, 200  ;;  %v601_v62 = vsub.f32 %v379_v12, %v555_v44  ;;  %v559_v50 = vsel %vm558_vm8, %v1425_v32, %v557_v47  ;;  %v381_v51 = vmul.f32 %v936_v48, %v1427_v33 }
  0xea   : > { %vm391_vm3 = vcmp.eq.f32.partialorder %v1448_v26, 0.0  ;;  %v938_v53 = vpop.eup %937  ;;  %v631_v54 = vmax.f32 %v615_v45, 0.0  ;;  %v392_v57 = vand.u32 2147483648, %v1448_v26  ;;  %vm572_vm4 = vcmp.eq.f32.partialorder %v1475_v15, inf }
  0xeb   : > { %945 = vrsqrt.f32 %v1513_v7  ;;  %v383_v10 = vsel %vm382_vm10, %v1427_v33, %v381_v51  ;;  %v564_v24 = vmul.f32 %v938_v53, %v1446_v55  ;;  %vm574_vm5 = vcmp.eq.f32.partialorder %v1475_v15, 0.0 }
  0xec   : > { %v575_v14 = vand.u32 2147483648, %v1475_v15  ;;  %v632_v41 = vmax.f32 %v616_v49, 0.0  ;;  %v562_v16 = vsel %vm560_vm9, %v561_v36, %v559_v50  ;;  %vm396_vm6 = vcmp.eq.f32.partialorder %v1482_v21, inf }
  0xed   : > { %947 = vrsqrt.f32 %v1521_v39  ;;  %vm685_vm7 = vcmp.lt.s32.totalorder %v1212_v2, 200  ;;  %v940_v17 = vpop.eup %939  ;;  %v617_v18 = vadd.f32 1.0, %v601_v62  ;;  %v386_v19 = vsel %vm384_vm12, %v385_v59, %v383_v10 }
  0xee   : > { %v566_v20 = vsel %vm565_vm13, %v1446_v55, %v564_v24  ;;  %vm398_vm8 = vcmp.eq.f32.partialorder %v1482_v21, 0.0  ;;  %949 = vrsqrt.f32 %v1551_v56  ;;  %v388_v32 = vmul.f32 %v940_v17, %v1448_v26 }
  0xef   : > { %v399_v22 = vand.u32 2147483648, %v1482_v21  ;;  %vm579_vm9 = vcmp.eq.f32.partialorder %v1513_v7, inf  ;;  %951 = vrsqrt.f32 %v1559_v60  ;;  %v942_v33 = vpop.eup %941  ;;  %v582_v23 = vand.u32 2147483648, %v1513_v7 }
  0xf0   : > { %v406_v61 = vand.u32 2147483648, %v1521_v39  ;;  %v589_v27 = vand.u32 2147483648, %v1551_v56  ;;  %v569_v40 = vsel %vm567_vm11, %v568_v42, %v566_v20  ;;  %v390_v28 = vsel %vm389_vm0, %v1448_v26, %v388_v32 }
  0xf1   : > { %v571_v37 = vmul.f32 %v942_v33, %v1475_v15  ;;  %vm403_vm12 = vcmp.eq.f32.partialorder %v1521_v39, inf  ;;  %v413_v13 = vand.u32 2147483648, %v1559_v60  ;;  %v602_v43 = vsub.f32 %v386_v19, %v562_v16 }
  0xf2   : > { %vm586_vm13 = vcmp.eq.f32.partialorder %v1551_v56, inf  ;;  %v393_v30 = vsel %vm391_vm3, %v392_v57, %v390_v28  ;;  %vm405_vm10 = vcmp.eq.f32.partialorder %v1521_v39, 0.0  ;;  %v633_v55 = vmax.f32 %v617_v18, 0.0  ;;  %v944_v35 = vpop.eup %943 }
  0xf3   : > { %v698_v8 = vsel %vm682_vm14, %v631_v54, 0.0  ;;  %v699_v31 = vsel %vm683_vm15, %v632_v41, 0.0  ;;  %v573_v52 = vsel %vm572_vm4, %v1475_v15, %v571_v37  ;;  %vm588_vm11 = vcmp.eq.f32.partialorder %v1551_v56, 0.0 }
  0xf4   : > { %vm410_vm0 = vcmp.eq.f32.partialorder %v1559_v60, inf  ;;  %v603_v26 = vsub.f32 %v393_v30, %v569_v40  ;;  %v618_v36 = vadd.f32 1.0, %v602_v43  ;;  %vm687_vm3 = vcmp.lt.s32.totalorder %v1221_v5, 200 }
  0xf5   : > { %v719_v63 = vadd.f32 %v1498_v29, %v1464_v11  ;;  %v395_v9 = vmul.f32 %v944_v35, %v1482_v21  ;;  %v576_v0 = vsel %vm574_vm5, %v575_v14, %v573_v52  ;;  %v700_v38 = vsel %vm684_vm2, %v633_v55, 0.0  ;;  %v946_v25 = vpop.eup %945 }
  0xf6   : > { %v720_v59 = vsel %vm706_vm1, %v1531_v46, 0.0  ;;  %v619_v45 = vadd.f32 1.0, %v603_v26  ;;  %v634_v44 = vmax.f32 %v618_v36, 0.0  ;;  %v722_v47 = vsel %vm706_vm1, %v698_v8, 0.0 }
  0xf7   : > { %v721_v58 = vadd.f32 %v720_v59, %v719_v63  ;;  %v397_v11 = vsel %vm396_vm6, %v1482_v21, %v395_v9  ;;  %v578_v29 = vmul.f32 %v946_v25, %v1513_v7  ;;  %vm581_vm14 = vcmp.eq.f32.partialorder %v1513_v7, 0.0  ;;  %v948_v15 = vpop.eup %947 }
  0xf8   : > { %v724_v1 = vsel %vm706_vm1, %v699_v31, 0.0  ;;  %v400_v46 = vsel %vm398_vm8, %v399_v22, %v397_v11  ;;  %v635_v42 = vmax.f32 %v619_v45, 0.0  ;;  %v726_v49 = vsel %vm706_vm1, %v700_v38, 0.0  ;;  %v950_v12 = vpop.eup %949 }
  0xf9   : > { %v723_v48 = vadd.f32 %v722_v47, %v721_v58  ;;  %v402_v62 = vmul.f32 %v948_v15, %v1521_v39  ;;  %v580_v50 = vsel %vm579_vm9, %v1513_v7, %v578_v29  ;;  %v604_v51 = vsub.f32 %v400_v46, %v576_v0  ;;  %v952_v54 = vpop.eup %951 }
  0xfa   : > { %v701_v53 = vsel %vm685_vm7, %v634_v44, 0.0  ;;  %v585_v57 = vmul.f32 %v950_v12, %v1551_v56  ;;  %vm412_vm15 = vcmp.eq.f32.partialorder %v1559_v60, 0.0  ;;  %v583_v21 = vsel %vm581_vm14, %v582_v23, %v580_v50 }
  0xfb   : > { %v725_v10 = vadd.f32 %v724_v1, %v723_v48  ;;  %v409_v24 = vmul.f32 %v952_v54, %v1559_v60  ;;  %v404_v14 = vsel %vm403_vm12, %v1521_v39, %v402_v62  ;;  %v620_v41 = vadd.f32 1.0, %v604_v51 }
  0xfc   : > { %vm1709_vm2 = vcmp.lt.s32.totalorder %v1215_v3, 200  ;;  %v587_v2 = vsel %vm586_vm13, %v1551_v56, %v585_v57  ;;  %v407_v16 = vsel %vm405_vm10, %v406_v61, %v404_v14  ;;  %v728_v18 = vsel %vm706_vm1, %v701_v53, 0.0 }
  0xfd   : > { %v702_v7 = vsel %vm1709_vm2, %v635_v42, 0.0  ;;  %v727_v17 = vadd.f32 %v726_v49, %v725_v10  ;;  %v411_v19 = vsel %vm410_vm0, %v1559_v60, %v409_v24  ;;  %v590_v20 = vsel %vm588_vm11, %v589_v27, %v587_v2 }
  0xfe   : > { %v605_v32 = vsub.f32 %v407_v16, %v583_v21  ;;  %v636_v3 = vmax.f32 %v620_v41, 0.0  ;;  %v414_v22 = vsel %vm412_vm15, %v413_v13, %v411_v19  ;;  %v673_v33 = vadd.s32 %v1159_v34, %v1218_v4 }
  0xff   : > { %v730_v23 = vsel %vm706_vm1, %v702_v7, 0.0  ;;  %v606_v39 = vsub.f32 %v414_v22, %v590_v20  ;;  %v729_v28 = vadd.f32 %v728_v18, %v727_v17  ;;  %vm688_vm4 = vcmp.lt.s32.totalorder %v1224_v6, 200 }
 0x100   : > { %v621_v61 = vadd.f32 1.0, %v605_v32  ;;  %v703_v40 = vsel %vm687_vm3, %v636_v3, 0.0  ;;  %vm689_vm5 = vcmp.lt.s32.totalorder %v673_v33, 200 }
 0x101   : > { %v732_v60 = vsel %vm706_vm1, %v703_v40, 0.0  ;;  %v622_v56 = vadd.f32 1.0, %v606_v39  ;;  %v731_v37 = vadd.f32 %v730_v23, %v729_v28 }
 0x102   : > { %v637_v27 = vmax.f32 %v621_v61, 0.0 }
 0x103   : > { %v638_v13 = vmax.f32 %v622_v56, 0.0  ;;  %v733_v34 = vadd.f32 %v732_v60, %v731_v37 }
 0x104   : > { %v704_v43 = vsel %vm688_vm4, %v637_v27, 0.0 }
 0x105   : > { %v734_v4 = vsel %vm706_vm1, %v704_v43, 0.0  ;;  %v705_v30 = vsel %vm689_vm5, %v638_v13, 0.0 }
 0x106   : > { %v735_v55 = vadd.f32 %v734_v4, %v733_v34  ;;  %v736_v5 = vsel %vm706_vm1, %v705_v30, 0.0 }
 0x108   : > { %v737_v8 = vadd.f32 %v736_v5, %v735_v55 }
 0x10a   : > { %738 = vadd.xlane.f32.xlu0 %v737_v8 }
 0x197   : > { %v739_v6 = vpop.xlane.xlu0 %738 }
 0x198   : > { %v740_v31 = vrot.slane %v739_v6, 4 }
 0x19a   : > { %v741_v35 = vadd.f32 %v740_v31, %v739_v6 }
 0x19c   : > { %v742_v52 = vrot.slane %v741_v35, 2 }
 0x19e   : > { %v743_v26 = vadd.f32 %v742_v52, %v741_v35 }
 0x1a0   : > { %v744_v36 = vrot.slane %v743_v26, 1 }
 0x1a2   : > { %v745_v63 = vadd.f32 %v744_v36, %v743_v26 }
 0x1a4   : > { %848 = vpush %v745_v63 }
 0x1d5   : > { %s849_s6 = spop %848 }
 0x1d6   : > { %v747_v9 = vstv %s849_s6 }
 0x1d7   : > { %748 = vst [vmem:[%s177_s4] sm:$0xff] %v747_v9 }
 0x1d8   : > { %966 = shalt.err (!%p963_p3)
}
 0x1d9   : > { %s967_s13 = scalar_lea.hbm %s1664_s14, 128  ;;  %s971_s26 = scalar_lea.hbm %s1706_s2, 256 }
 0x1da   : > { %p968_p4 = scmp.ne.s32.totalorder %s1664_s14, %s967_s13  ;;  %p972_p9 = scmp.lt.u32.totalorder %s1664_s14, %s1706_s2 }
 0x1db   : > { %p973_p10 = scmp.lt.u32.totalorder %s971_s26, %s967_s13  ;;  %p975_p12 = scmp.lt.u32.totalorder %s967_s13, %s1664_s14 }
 0x1dc   : > { %p969_p7 = pnand %p968_p4, %p1071_p5 }
 0x1dd   : > { %p974_p11 = por %p973_p10, %p972_p9 }
 0x1de   : > { %p970_p8 = pneg %p969_p7 }
 0x1df   : > { %p976_p13 = por %p975_p12, %p974_p11 }
 0x1e1   : > { %p977_p0 = pnand %p976_p13, %p970_p8 }
 0x1e3   : > { %980 = shalt.err (!%p977_p0)
}
 0x1e4   : > { %850 = dma.vmem_to_hbm [thread:$0]  (%p1071_p5), %s1657_s5, 128, %s1664_s14, %s750_s16  }
 0x1e5 PF: > { %p856_p1 = scmp.ge.s32.totalorder %s1015_s12, 2  ;;  %s775_s29 = sand.u32 1, %s1003_s9  }
 0x1e6   : > { %s776_s30 = scalar_lea.sflag [#allocation3], %s775_s29 }
 0x1e7   : > { %p853_p2 = pnand %p856_p1, %p1075_p6 }
 0x1e9   : > { %998 = dma.done.wait (!%p853_p2), %s776_s30, 128  }
 0x1ea   : > { %1000 = vsyncadd (!%p853_p2), %s776_s30, 4294967168  ;;  %p12_p3 = scmp.ge.s32.totalorder %s1058_s15, 4   ;;  %s1710_s9 = smov %s1007_s10 }
 0x1eb   : > { %s1711_s10 = smov %s1011_s11  ;;  %s1712_s11 = smov %s1069_s18 }
 0x1ec   : > { %s1713_s12 = smov %s1058_s15  ;;  %14 = sbr.rel (!%p12_p3) target bundleno = 3 (0x3), region = 66 }
 0x1f3   :  { %781 = vsyncpa [#allocation3], 1 }
 0x1f4   :  { %783 = vsyncpa [#allocation3 + $0x1], 1 }

</bundles_post_ra>
